<compile_context>
chip_gen: v7x
topology: tpu7x:2x2x1
jax: 0.10.0
libtpu: 0.0.40
codegen_flags: <defaults>
</compile_context>

<pallas_src>
import functools

import jax
import jax.numpy as jnp
from jax import lax
from jax.experimental import pallas as pl
from jax.experimental.pallas import tpu as pltpu


# ----------------------------------------------------------------------------
# Fused kernels (one pallas_call per InvertedResidual block, grid=(N,))
# ----------------------------------------------------------------------------
def _fused_kernel_s1(x_ref, msk_ref, wpw1_ref, b1_ref, wdw_ref, b2_ref,
                     wpw2_ref, b3_ref, o_ref, *, H, W, Cb):
    """stride==1 block: identity half + branch2; concat + shuffle fused."""
    S = H * W
    x1 = x_ref[0, :Cb, :]                                  # identity half (Cb,S)
    x2 = x_ref[0, Cb:, :]                                  # branch2 input (Cb,S)

    # 1x1 conv (BN folded into weights) + ReLU: bf16 MXU, f32 accumulate.
    y = jnp.dot(wpw1_ref[...], x2.astype(jnp.bfloat16),
                preferred_element_type=jnp.float32)
    y = jnp.maximum(y + b1_ref[...], 0.0)

    # depthwise 3x3, stride 1, zero pad 1 (BN folded): nine XLU lane-rotates
    # with precomputed (9, S) border masks — no in-kernel div/mod/compares.
    wdw = wdw_ref[...]                                     # (Cb, 9) f32
    msk = msk_ref[...]                                     # (9, S)  f32
    acc = wdw[:, 4:5] * y                                  # center tap: no mask/roll
    for k in range(9):
        if k == 4:
            continue
        dy, dx = k // 3 - 1, k % 3 - 1
        off = dy * W + dx
        shifted = pltpu.roll(y, (-off) % S, 1)
        acc = acc + wdw[:, k:k + 1] * (shifted * msk[k:k + 1, :])
    d = acc + b2_ref[...]

    # second 1x1 conv (BN folded) + ReLU
    z = jnp.dot(wpw2_ref[...], d.astype(jnp.bfloat16),
                preferred_element_type=jnp.float32)
    z = jnp.maximum(z + b3_ref[...], 0.0)

    # concat + channel_shuffle(groups=2): out chan 2j <- x1[j], 2j+1 <- z[j].
    o_ref[0, :, :S] = x1.astype(o_ref.dtype)
    o_ref[0, :, S:] = z.astype(o_ref.dtype)


def _fused_kernel_s2(xs_ref, dwa_ref, ba1_ref, pwa_ref, ba2_ref,
                     pwb1_ref, bb1_ref, dwb_ref, bb2m_ref,
                     pwb2_ref, bb3_ref, o_ref, *, So):
    """stride>1 block: branch1 + branch2 fused; the input is the nine gathered
    3x3 tap planes at output resolution, laid out (Cin, 9*So) lane-dense."""
    xall = xs_ref[0]                                       # (Cin, 9*So)
    xall_f32 = xall.astype(jnp.float32)
    dwa = dwa_ref[...]                                     # (Cin, 9) f32
    dwb = dwb_ref[...]                                     # (Cb, 9)  f32

    # ---- branch1: dw3x3(stride) + BN  ->  1x1 (+BN) + ReLU ----
    d1 = dwa[:, 0:1] * xall_f32[:, :So]
    for k in range(1, 9):
        d1 = d1 + dwa[:, k:k + 1] * xall_f32[:, k * So:(k + 1) * So]
    d1 = d1 + ba1_ref[...]
    y1 = jnp.dot(pwa_ref[...], d1.astype(jnp.bfloat16),
                 preferred_element_type=jnp.float32)
    y1 = jnp.maximum(y1 + ba2_ref[...], 0.0)

    # ---- branch2: 1x1 (+BN) + ReLU -> dw3x3(stride) + BN -> 1x1 (+BN) + ReLU
    # One big lane-dense MXU matmul over all nine tap planes at once.
    yall = jnp.dot(pwb1_ref[...], xall.astype(jnp.bfloat16),
                   preferred_element_type=jnp.float32)     # (Cb, 9*So)
    yall = jnp.maximum(yall + bb1_ref[...], 0.0)
    d2 = dwb[:, 0:1] * yall[:, :So]
    for k in range(1, 9):
        d2 = d2 + dwb[:, k:k + 1] * yall[:, k * So:(k + 1) * So]
    d2 = d2 + bb2m_ref[...]                                # border-corrected bias map
    y2 = jnp.dot(pwb2_ref[...], d2.astype(jnp.bfloat16),
                 preferred_element_type=jnp.float32)
    y2 = jnp.maximum(y2 + bb3_ref[...], 0.0)

    # concat + channel_shuffle(groups=2): out chan 2j <- y1[j], 2j+1 <- y2[j].
    o_ref[0, :, :So] = y1.astype(o_ref.dtype)
    o_ref[0, :, So:] = y2.astype(o_ref.dtype)


# ----------------------------------------------------------------------------
# Module-level forward (NCHW in / NCHW out; all reshapes are free metadata)
# ----------------------------------------------------------------------------
def _const_spec(shape):
    return pl.BlockSpec(shape, lambda n, _nd=len(shape): (0,) * _nd)


def inverted_residual(x_nchw, params, stride):
    """ShuffleNetV2 InvertedResidual forward (eval-mode BN folded into params)."""
    N, Cin, H, W = x_nchw.shape
    S = H * W
    cp = pltpu.CompilerParams(dimension_semantics=("parallel",))

    if stride == 1:
        Cb = Cin // 2
        p = params["branch2"]

        # Precompute the nine zero-pad border masks (depend only on H, W).
        hh = jnp.arange(H)[:, None]
        ww = jnp.arange(W)[None, :]
        rows = []
        for k in range(9):
            dy, dx = k // 3 - 1, k % 3 - 1
            valid = ((hh + dy >= 0) & (hh + dy < H) &
                     (ww + dx >= 0) & (ww + dx < W))
            rows.append(valid.reshape(-1))
        msk = jnp.stack(rows).astype(jnp.float32)          # (9, S)

        x = x_nchw.reshape(N, Cin, S)                      # free reshape
        operands = (x, msk, p["wpw1"], p["b1"], p["wdw"], p["b2"],
                    p["wpw2"], p["b3"])
        out = pl.pallas_call(
            functools.partial(_fused_kernel_s1, H=H, W=W, Cb=Cb),
            out_shape=jax.ShapeDtypeStruct((N, Cb, 2 * S), x_nchw.dtype),
            grid=(N,),
            in_specs=[pl.BlockSpec((1, Cin, S), lambda n: (n, 0, 0))] +
                     [_const_spec(op.shape) for op in operands[1:]],
            out_specs=pl.BlockSpec((1, Cb, 2 * S), lambda n: (n, 0, 0)),
            compiler_params=cp,
        )(*operands)
        # output slab is already channel-shuffled -> free reshape
        return out.reshape(N, 2 * Cb, H, W)

    # ---------------- stride > 1 (downsampling block) ----------------
    Ho = (H - 1) // stride + 1
    Wo = (W - 1) // stride + 1
    So = Ho * Wo
    p1, p2 = params["branch1"], params["branch2"]
    Cb = p2["wpw2"].shape[0]

    # Gather the nine zero-padded, stride-subsampled 3x3 tap planes of x with
    # plain XLA strided slices; the kernel then works fully at output
    # resolution (no stride-selection matmul, no full-res depthwise).
    x_pad = jnp.pad(x_nchw, ((0, 0), (0, 0), (1, 1), (1, 1)))
    planes = []
    for kh in range(3):
        for kw in range(3):
            planes.append(x_pad[:, :, kh:kh + (Ho - 1) * stride + 1:stride,
                                 kw:kw + (Wo - 1) * stride + 1:stride])
    xs = jnp.stack(planes, axis=2).reshape(N, Cin, 9 * So)

    # branch2 border fix: at padded positions the kernel's relu(pw1) plane is
    # relu(b1) instead of the true 0, so fold the exact correction into a
    # per-position bias map for the depthwise+BN stage (zero extra kernel ops).
    oh = jnp.arange(Ho)[:, None]
    ow = jnp.arange(Wo)[None, :]
    relu_b1 = jax.nn.relu(p2["b1"])                        # (Cb, 1)
    corr = jnp.zeros((Cb, So), jnp.float32)
    for k in range(9):
        kh, kw = k // 3, k % 3
        hs = oh * stride + kh - 1
        ws = ow * stride + kw - 1
        inval = ((hs < 0) | (hs >= H) | (ws < 0) | (ws >= W))
        corr = corr + (p2["wdw"][:, k:k + 1] * relu_b1) * \
            inval.reshape(1, So).astype(jnp.float32)
    bb2_map = p2["b2"] - corr                              # (Cb, So)

    operands = (xs, p1["wdw"], p1["b1"], p1["wpw"], p1["b2"],
                p2["wpw1"], p2["b1"], p2["wdw"], bb2_map,
                p2["wpw2"], p2["b3"])
    out = pl.pallas_call(
        functools.partial(_fused_kernel_s2, So=So),
        out_shape=jax.ShapeDtypeStruct((N, Cb, 2 * So), x_nchw.dtype),
        grid=(N,),
        in_specs=[pl.BlockSpec((1, Cin, 9 * So), lambda n: (n, 0, 0))] +
                 [_const_spec(op.shape) for op in operands[1:]],
        out_specs=pl.BlockSpec((1, Cb, 2 * So), lambda n: (n, 0, 0)),
        compiler_params=cp,
    )(*operands)
    return out.reshape(N, 2 * Cb, Ho, Wo)


# ----------------------------------------------------------------------------
# Deterministic synthetic parameters (eval-mode BN folded into weights/biases)
# ----------------------------------------------------------------------------
def _fold_bn(gamma, beta, mean, var, eps=1e-5):
    scale = gamma / jnp.sqrt(var + eps)
    bias = beta - mean * scale
    return scale.astype(jnp.float32), bias.astype(jnp.float32)


def init_params(key, inp, oup, stride):
    """Pointwise weights: scale-folded bf16 (Cout, Cin).  Depthwise taps:
    scale-folded f32 (C, 9), tap index k = 3*kh + kw.  Biases: f32 (C, 1)."""
    bf = oup // 2
    assert stride != 1 or inp == bf * 2
    cin2 = inp if stride > 1 else bf
    keys = jax.random.split(key, 5)

    def nrm(k, shape, s=0.2):
        return s * jax.random.normal(k, shape, dtype=jnp.float32)

    def bn(k, c):
        k1, k2, k3, k4 = jax.random.split(k, 4)
        gamma = 1.0 + 0.1 * jax.random.normal(k1, (c,))
        beta = 0.1 * jax.random.normal(k2, (c,))
        mean = 0.1 * jax.random.normal(k3, (c,))
        var = 1.0 + 0.1 * jax.random.uniform(k4, (c,))
        return _fold_bn(gamma, beta, mean, var)

    def pw_bn(k, cout, cin):
        kw_, kb = jax.random.split(k)
        w = nrm(kw_, (cout, cin))
        s, b = bn(kb, cout)
        return (w * s[:, None]).astype(jnp.bfloat16), b.reshape(-1, 1)

    def dw_bn(k, c):
        kw_, kb = jax.random.split(k)
        w = nrm(kw_, (c, 9))
        s, b = bn(kb, c)
        return (w * s[:, None]).astype(jnp.float32), b.reshape(-1, 1)

    params = {"branch2": {}}
    b2 = params["branch2"]
    b2["wpw1"], b2["b1"] = pw_bn(keys[0], bf, cin2)
    b2["wdw"], b2["b2"] = dw_bn(keys[1], bf)
    b2["wpw2"], b2["b3"] = pw_bn(keys[2], bf, bf)
    if stride > 1:
        b1 = params["branch1"] = {}
        b1["wdw"], b1["b1"] = dw_bn(keys[3], inp)
        b1["wpw"], b1["b2"] = pw_bn(keys[4], bf, inp)
    return params


# ----------------------------------------------------------------------------
# Pure-JAX reference (NCHW, lax convs, f32 math) for validation
# ----------------------------------------------------------------------------
def _ref_forward(x, params, stride):
    f32 = jnp.float32

    def pw(t, w, b):
        wt = w.astype(f32)[:, :, None, None]
        y = lax.conv_general_dilated(t, wt, (1, 1), "VALID",
                                     dimension_numbers=("NCHW", "OIHW", "NCHW"))
        return y + b.reshape(1, -1, 1, 1)

    def dw(t, w9, b, s):
        c = t.shape[1]
        wt = w9.astype(f32).reshape(c, 1, 3, 3)
        y = lax.conv_general_dilated(t, wt, (s, s), ((1, 1), (1, 1)),
                                     dimension_numbers=("NCHW", "OIHW", "NCHW"),
                                     feature_group_count=c)
        return y + b.reshape(1, -1, 1, 1)

    def branch2(t, p):
        y = jax.nn.relu(pw(t, p["wpw1"], p["b1"]))
        y = dw(y, p["wdw"], p["b2"], stride)
        return jax.nn.relu(pw(y, p["wpw2"], p["b3"]))

    def branch1(t, p):
        y = dw(t, p["wdw"], p["b1"], stride)
        return jax.nn.relu(pw(y, p["wpw"], p["b2"]))

    if stride == 1:
        c = x.shape[1]
        out = jnp.concatenate(
            [x[:, :c // 2], branch2(x[:, c // 2:], params["branch2"])], axis=1)
    else:
        out = jnp.concatenate(
            [branch1(x, params["branch1"]), branch2(x, params["branch2"])],
            axis=1)
    n, cc, h, w = out.shape
    out = out.reshape(n, 2, cc // 2, h, w)
    return jnp.transpose(out, (0, 2, 1, 3, 4)).reshape(n, cc, h, w)


# ----------------------------------------------------------------------------
if __name__ == "__main__":
    key = jax.random.PRNGKey(0)
    kx, kp1, kp2 = jax.random.split(key, 3)

    fwd = jax.jit(inverted_residual, static_argnames=("stride",))

    def check(out, ref):
        # bf16-at-the-MXU path: tolerances cover the intentional bf16 rounding
        # of matmul operands (structural bugs would miss by orders of magnitude).
        rel = jnp.linalg.norm(out - ref) / (jnp.linalg.norm(ref) + 1e-12)
        assert jnp.allclose(out, ref, atol=6e-2, rtol=6e-2), \
            float(jnp.max(jnp.abs(out - ref)))
        assert rel < 2e-2, float(rel)

    # --- stride = 1 block: inp == oup, identity shortcut on first half ---
    inp, oup, stride = 8, 8, 1
    x = jax.random.normal(kx, (2, inp, 16, 16), dtype=jnp.float32)
    p1 = init_params(kp1, inp, oup, stride)
    out1 = jax.block_until_ready(fwd(x, p1, stride=stride))
    assert out1.shape == (2, oup, 16, 16)
    check(out1, _ref_forward(x, p1, stride))

    # --- stride = 2 downsampling block: both branches fused in one kernel ---
    inp, oup, stride = 8, 16, 2
    p2 = init_params(kp2, inp, oup, stride)
    out2 = jax.block_until_ready(fwd(x, p2, stride=stride))
    assert out2.shape == (2, oup, 8, 8)
    check(out2, _ref_forward(x, p2, stride))

    print("KERNEL_OK")
</pallas_src>

<mosaic_0001>
module attributes {stable_mosaic.version = 11 : i64} {
  func.func @_fused_kernel_s1(%arg0: i32, %arg1: memref<1x8x256xf32, #tpu.memory_space<vmem>>, %arg2: memref<9x256xf32, #tpu.memory_space<vmem>>, %arg3: memref<4x4xbf16, #tpu.memory_space<vmem>>, %arg4: memref<4x1xf32, #tpu.memory_space<vmem>>, %arg5: memref<4x9xf32, #tpu.memory_space<vmem>>, %arg6: memref<4x1xf32, #tpu.memory_space<vmem>>, %arg7: memref<4x4xbf16, #tpu.memory_space<vmem>>, %arg8: memref<4x1xf32, #tpu.memory_space<vmem>>, %arg9: memref<1x4x512xf32, #tpu.memory_space<vmem>>) attributes {dimension_semantics = [#tpu.dimension_semantics<parallel>], iteration_bounds = array<i64: 2>, scalar_prefetch = 0 : i64, scratch_operands = 0 : i64, tpu.core_type = #tpu.core_type<tc>, window_params = [{transform_indices = @transform_0, window_bounds = array<i64: 1, 8, 256>}, {pipeline_mode = #tpu.pipeline_mode<synchronous>, transform_indices = @transform_1, window_bounds = array<i64: 9, 256>}, {pipeline_mode = #tpu.pipeline_mode<synchronous>, transform_indices = @transform_2, window_bounds = array<i64: 4, 4>}, {pipeline_mode = #tpu.pipeline_mode<synchronous>, transform_indices = @transform_3, window_bounds = array<i64: 4, 1>}, {pipeline_mode = #tpu.pipeline_mode<synchronous>, transform_indices = @transform_4, window_bounds = array<i64: 4, 9>}, {pipeline_mode = #tpu.pipeline_mode<synchronous>, transform_indices = @transform_5, window_bounds = array<i64: 4, 1>}, {pipeline_mode = #tpu.pipeline_mode<synchronous>, transform_indices = @transform_6, window_bounds = array<i64: 4, 4>}, {pipeline_mode = #tpu.pipeline_mode<synchronous>, transform_indices = @transform_7, window_bounds = array<i64: 4, 1>}, {transform_indices = @transform_8, window_bounds = array<i64: 1, 4, 512>}]} {
    %c0 = arith.constant 0 : index
    %c0_0 = arith.constant 0 : index
    %c0_1 = arith.constant 0 : index
    %0 = vector.load %arg1[%c0, %c0_0, %c0_1] : memref<1x8x256xf32, #tpu.memory_space<vmem>>, vector<1x4x256xf32>
    %1 = vector.shape_cast %0 : vector<1x4x256xf32> to vector<4x256xf32>
    %c0_2 = arith.constant 0 : index
    %c4 = arith.constant 4 : index
    %c0_3 = arith.constant 0 : index
    %2 = vector.load %arg1[%c0_2, %c4, %c0_3] : memref<1x8x256xf32, #tpu.memory_space<vmem>>, vector<1x4x256xf32>
    %3 = vector.shape_cast %2 : vector<1x4x256xf32> to vector<4x256xf32>
    %c0_4 = arith.constant 0 : index
    %c0_5 = arith.constant 0 : index
    %4 = vector.load %arg3[%c0_4, %c0_5] : memref<4x4xbf16, #tpu.memory_space<vmem>>, vector<4x4xbf16>
    %5 = arith.truncf %3 : vector<4x256xf32> to vector<4x256xbf16>
    %cst = arith.constant dense<0.000000e+00> : vector<4x256xf32>
    %6 = tpu.matmul %4, %5, %cst {dimension_numbers = #tpu.dot_dimension_numbers<[1], [0], [0], [1], [0, 0, 1, 1], [], []>} : vector<4x4xbf16>, vector<4x256xbf16>, vector<4x256xf32> -> vector<4x256xf32>
    %c0_6 = arith.constant 0 : index
    %c0_7 = arith.constant 0 : index
    %7 = vector.load %arg4[%c0_6, %c0_7] : memref<4x1xf32, #tpu.memory_space<vmem>>, vector<4x1xf32>
    %8 = vector.broadcast %7 : vector<4x1xf32> to vector<4x256xf32>
    %9 = arith.addf %6, %8 : vector<4x256xf32>
    %cst_8 = arith.constant 0.000000e+00 : f32
    %10 = vector.broadcast %cst_8 : f32 to vector<4x256xf32>
    %11 = arith.maximumf %9, %10 : vector<4x256xf32>
    %c0_9 = arith.constant 0 : index
    %c0_10 = arith.constant 0 : index
    %12 = vector.load %arg5[%c0_9, %c0_10] : memref<4x9xf32, #tpu.memory_space<vmem>>, vector<4x9xf32>
    %c0_11 = arith.constant 0 : index
    %c0_12 = arith.constant 0 : index
    %13 = vector.load %arg2[%c0_11, %c0_12] : memref<9x256xf32, #tpu.memory_space<vmem>>, vector<9x256xf32>
    %14 = vector.extract_strided_slice %12 {offsets = [0, 4], sizes = [4, 1], strides = [1, 1]} : vector<4x9xf32> to vector<4x1xf32>
    %15 = vector.broadcast %14 : vector<4x1xf32> to vector<4x256xf32>
    %16 = arith.mulf %15, %11 : vector<4x256xf32>
    %c17_i32 = arith.constant 17 : i32
    %17 = tpu.dynamic_rotate %11 by %c17_i32 dim 1 : vector<4x256xf32>, i32 -> vector<4x256xf32>
    %18 = vector.extract_strided_slice %12 {offsets = [0, 0], sizes = [4, 1], strides = [1, 1]} : vector<4x9xf32> to vector<4x1xf32>
    %19 = vector.extract_strided_slice %13 {offsets = [0, 0], sizes = [1, 256], strides = [1, 1]} : vector<9x256xf32> to vector<1x256xf32>
    %20 = vector.broadcast %19 : vector<1x256xf32> to vector<4x256xf32>
    %21 = arith.mulf %17, %20 : vector<4x256xf32>
    %22 = vector.broadcast %18 : vector<4x1xf32> to vector<4x256xf32>
    %23 = arith.mulf %22, %21 : vector<4x256xf32>
    %24 = arith.addf %16, %23 : vector<4x256xf32>
    %c16_i32 = arith.constant 16 : i32
    %25 = tpu.dynamic_rotate %11 by %c16_i32 dim 1 : vector<4x256xf32>, i32 -> vector<4x256xf32>
    %26 = vector.extract_strided_slice %12 {offsets = [0, 1], sizes = [4, 1], strides = [1, 1]} : vector<4x9xf32> to vector<4x1xf32>
    %27 = vector.extract_strided_slice %13 {offsets = [1, 0], sizes = [1, 256], strides = [1, 1]} : vector<9x256xf32> to vector<1x256xf32>
    %28 = vector.broadcast %27 : vector<1x256xf32> to vector<4x256xf32>
    %29 = arith.mulf %25, %28 : vector<4x256xf32>
    %30 = vector.broadcast %26 : vector<4x1xf32> to vector<4x256xf32>
    %31 = arith.mulf %30, %29 : vector<4x256xf32>
    %32 = arith.addf %24, %31 : vector<4x256xf32>
    %c15_i32 = arith.constant 15 : i32
    %33 = tpu.dynamic_rotate %11 by %c15_i32 dim 1 : vector<4x256xf32>, i32 -> vector<4x256xf32>
    %34 = vector.extract_strided_slice %12 {offsets = [0, 2], sizes = [4, 1], strides = [1, 1]} : vector<4x9xf32> to vector<4x1xf32>
    %35 = vector.extract_strided_slice %13 {offsets = [2, 0], sizes = [1, 256], strides = [1, 1]} : vector<9x256xf32> to vector<1x256xf32>
    %36 = vector.broadcast %35 : vector<1x256xf32> to vector<4x256xf32>
    %37 = arith.mulf %33, %36 : vector<4x256xf32>
    %38 = vector.broadcast %34 : vector<4x1xf32> to vector<4x256xf32>
    %39 = arith.mulf %38, %37 : vector<4x256xf32>
    %40 = arith.addf %32, %39 : vector<4x256xf32>
    %c1_i32 = arith.constant 1 : i32
    %41 = tpu.dynamic_rotate %11 by %c1_i32 dim 1 : vector<4x256xf32>, i32 -> vector<4x256xf32>
    %42 = vector.extract_strided_slice %12 {offsets = [0, 3], sizes = [4, 1], strides = [1, 1]} : vector<4x9xf32> to vector<4x1xf32>
    %43 = vector.extract_strided_slice %13 {offsets = [3, 0], sizes = [1, 256], strides = [1, 1]} : vector<9x256xf32> to vector<1x256xf32>
    %44 = vector.broadcast %43 : vector<1x256xf32> to vector<4x256xf32>
    %45 = arith.mulf %41, %44 : vector<4x256xf32>
    %46 = vector.broadcast %42 : vector<4x1xf32> to vector<4x256xf32>
    %47 = arith.mulf %46, %45 : vector<4x256xf32>
    %48 = arith.addf %40, %47 : vector<4x256xf32>
    %c255_i32 = arith.constant 255 : i32
    %49 = tpu.dynamic_rotate %11 by %c255_i32 dim 1 : vector<4x256xf32>, i32 -> vector<4x256xf32>
    %50 = vector.extract_strided_slice %12 {offsets = [0, 5], sizes = [4, 1], strides = [1, 1]} : vector<4x9xf32> to vector<4x1xf32>
    %51 = vector.extract_strided_slice %13 {offsets = [5, 0], sizes = [1, 256], strides = [1, 1]} : vector<9x256xf32> to vector<1x256xf32>
    %52 = vector.broadcast %51 : vector<1x256xf32> to vector<4x256xf32>
    %53 = arith.mulf %49, %52 : vector<4x256xf32>
    %54 = vector.broadcast %50 : vector<4x1xf32> to vector<4x256xf32>
    %55 = arith.mulf %54, %53 : vector<4x256xf32>
    %56 = arith.addf %48, %55 : vector<4x256xf32>
    %c241_i32 = arith.constant 241 : i32
    %57 = tpu.dynamic_rotate %11 by %c241_i32 dim 1 : vector<4x256xf32>, i32 -> vector<4x256xf32>
    %58 = vector.extract_strided_slice %12 {offsets = [0, 6], sizes = [4, 1], strides = [1, 1]} : vector<4x9xf32> to vector<4x1xf32>
    %59 = vector.extract_strided_slice %13 {offsets = [6, 0], sizes = [1, 256], strides = [1, 1]} : vector<9x256xf32> to vector<1x256xf32>
    %60 = vector.broadcast %59 : vector<1x256xf32> to vector<4x256xf32>
    %61 = arith.mulf %57, %60 : vector<4x256xf32>
    %62 = vector.broadcast %58 : vector<4x1xf32> to vector<4x256xf32>
    %63 = arith.mulf %62, %61 : vector<4x256xf32>
    %64 = arith.addf %56, %63 : vector<4x256xf32>
    %c240_i32 = arith.constant 240 : i32
    %65 = tpu.dynamic_rotate %11 by %c240_i32 dim 1 : vector<4x256xf32>, i32 -> vector<4x256xf32>
    %66 = vector.extract_strided_slice %12 {offsets = [0, 7], sizes = [4, 1], strides = [1, 1]} : vector<4x9xf32> to vector<4x1xf32>
    %67 = vector.extract_strided_slice %13 {offsets = [7, 0], sizes = [1, 256], strides = [1, 1]} : vector<9x256xf32> to vector<1x256xf32>
    %68 = vector.broadcast %67 : vector<1x256xf32> to vector<4x256xf32>
    %69 = arith.mulf %65, %68 : vector<4x256xf32>
    %70 = vector.broadcast %66 : vector<4x1xf32> to vector<4x256xf32>
    %71 = arith.mulf %70, %69 : vector<4x256xf32>
    %72 = arith.addf %64, %71 : vector<4x256xf32>
    %c239_i32 = arith.constant 239 : i32
    %73 = tpu.dynamic_rotate %11 by %c239_i32 dim 1 : vector<4x256xf32>, i32 -> vector<4x256xf32>
    %74 = vector.extract_strided_slice %12 {offsets = [0, 8], sizes = [4, 1], strides = [1, 1]} : vector<4x9xf32> to vector<4x1xf32>
    %75 = vector.extract_strided_slice %13 {offsets = [8, 0], sizes = [1, 256], strides = [1, 1]} : vector<9x256xf32> to vector<1x256xf32>
    %76 = vector.broadcast %75 : vector<1x256xf32> to vector<4x256xf32>
    %77 = arith.mulf %73, %76 : vector<4x256xf32>
    %78 = vector.broadcast %74 : vector<4x1xf32> to vector<4x256xf32>
    %79 = arith.mulf %78, %77 : vector<4x256xf32>
    %80 = arith.addf %72, %79 : vector<4x256xf32>
    %c0_13 = arith.constant 0 : index
    %c0_14 = arith.constant 0 : index
    %81 = vector.load %arg6[%c0_13, %c0_14] : memref<4x1xf32, #tpu.memory_space<vmem>>, vector<4x1xf32>
    %82 = vector.broadcast %81 : vector<4x1xf32> to vector<4x256xf32>
    %83 = arith.addf %80, %82 : vector<4x256xf32>
    %c0_15 = arith.constant 0 : index
    %c0_16 = arith.constant 0 : index
    %84 = vector.load %arg7[%c0_15, %c0_16] : memref<4x4xbf16, #tpu.memory_space<vmem>>, vector<4x4xbf16>
    %85 = arith.truncf %83 : vector<4x256xf32> to vector<4x256xbf16>
    %cst_17 = arith.constant dense<0.000000e+00> : vector<4x256xf32>
    %86 = tpu.matmul %84, %85, %cst_17 {dimension_numbers = #tpu.dot_dimension_numbers<[1], [0], [0], [1], [0, 0, 1, 1], [], []>} : vector<4x4xbf16>, vector<4x256xbf16>, vector<4x256xf32> -> vector<4x256xf32>
    %c0_18 = arith.constant 0 : index
    %c0_19 = arith.constant 0 : index
    %87 = vector.load %arg8[%c0_18, %c0_19] : memref<4x1xf32, #tpu.memory_space<vmem>>, vector<4x1xf32>
    %88 = vector.broadcast %87 : vector<4x1xf32> to vector<4x256xf32>
    %89 = arith.addf %86, %88 : vector<4x256xf32>
    %cst_20 = arith.constant 0.000000e+00 : f32
    %90 = vector.broadcast %cst_20 : f32 to vector<4x256xf32>
    %91 = arith.maximumf %89, %90 : vector<4x256xf32>
    %c0_21 = arith.constant 0 : index
    %c0_22 = arith.constant 0 : index
    %c0_23 = arith.constant 0 : index
    %92 = vector.load %arg9[%c0_21, %c0_22, %c0_23] : memref<1x4x512xf32, #tpu.memory_space<vmem>>, vector<1x4x256xf32>
    %93 = vector.shape_cast %92 : vector<1x4x256xf32> to vector<4x256xf32>
    %94 = vector.shape_cast %1 : vector<4x256xf32> to vector<1x4x256xf32>
    tpu.vector_store %arg9[%c0_21, %c0_22, %c0_23], %94 {strides = array<i32>} : memref<1x4x512xf32, #tpu.memory_space<vmem>>, vector<1x4x256xf32>,
    %c0_24 = arith.constant 0 : index
    %c0_25 = arith.constant 0 : index
    %c256 = arith.constant 256 : index
    %95 = vector.load %arg9[%c0_24, %c0_25, %c256] : memref<1x4x512xf32, #tpu.memory_space<vmem>>, vector<1x4x256xf32>
    %96 = vector.shape_cast %95 : vector<1x4x256xf32> to vector<4x256xf32>
    %97 = vector.shape_cast %91 : vector<4x256xf32> to vector<1x4x256xf32>
    tpu.vector_store %arg9[%c0_24, %c0_25, %c256], %97 {strides = array<i32>} : memref<1x4x512xf32, #tpu.memory_space<vmem>>, vector<1x4x256xf32>,
    return
  }
  func.func @transform_0(%arg0: i32) -> (i32, i32, i32) {
    %c0_i32 = arith.constant 0 : i32
    %c0_i32_0 = arith.constant 0 : i32
    %c0_i32_1 = arith.constant 0 : i32
    return %arg0, %c0_i32, %c0_i32_0 : i32, i32, i32
  }
  func.func @transform_1(%arg0: i32) -> (i32, i32) {
    %c0_i32 = arith.constant 0 : i32
    %c0_i32_0 = arith.constant 0 : i32
    %c0_i32_1 = arith.constant 0 : i32
    return %c0_i32, %c0_i32_0 : i32, i32
  }
  func.func @transform_2(%arg0: i32) -> (i32, i32) {
    %c0_i32 = arith.constant 0 : i32
    %c0_i32_0 = arith.constant 0 : i32
    %c0_i32_1 = arith.constant 0 : i32
    return %c0_i32, %c0_i32_0 : i32, i32
  }
  func.func @transform_3(%arg0: i32) -> (i32, i32) {
    %c0_i32 = arith.constant 0 : i32
    %c0_i32_0 = arith.constant 0 : i32
    %c0_i32_1 = arith.constant 0 : i32
    return %c0_i32, %c0_i32_0 : i32, i32
  }
  func.func @transform_4(%arg0: i32) -> (i32, i32) {
    %c0_i32 = arith.constant 0 : i32
    %c0_i32_0 = arith.constant 0 : i32
    %c0_i32_1 = arith.constant 0 : i32
    return %c0_i32, %c0_i32_0 : i32, i32
  }
  func.func @transform_5(%arg0: i32) -> (i32, i32) {
    %c0_i32 = arith.constant 0 : i32
    %c0_i32_0 = arith.constant 0 : i32
    %c0_i32_1 = arith.constant 0 : i32
    return %c0_i32, %c0_i32_0 : i32, i32
  }
  func.func @transform_6(%arg0: i32) -> (i32, i32) {
    %c0_i32 = arith.constant 0 : i32
    %c0_i32_0 = arith.constant 0 : i32
    %c0_i32_1 = arith.constant 0 : i32
    return %c0_i32, %c0_i32_0 : i32, i32
  }
  func.func @transform_7(%arg0: i32) -> (i32, i32) {
    %c0_i32 = arith.constant 0 : i32
    %c0_i32_0 = arith.constant 0 : i32
    %c0_i32_1 = arith.constant 0 : i32
    return %c0_i32, %c0_i32_0 : i32, i32
  }
  func.func @transform_8(%arg0: i32) -> (i32, i32, i32) {
    %c0_i32 = arith.constant 0 : i32
    %c0_i32_0 = arith.constant 0 : i32
    %c0_i32_1 = arith.constant 0 : i32
    return %arg0, %c0_i32, %c0_i32_0 : i32, i32, i32
  }
}

</mosaic_0001>

<bundles_post_ra>
// kernel: inverted_residual.1
= control target key start
LH: loop header
LB: loop body
LE: loop exit
PB: predicated region body
PF: predicated region fallthrough
CT: control target
= control target key end

     0   :  { %s853_s27 = smov 0   ;;  %s1031_s0 = inlined_call_operand.vmem [shape: f32[2,8,256], index: 0, kind: input, shape index: {}]   ;;  %s1032_s1 = inlined_call_operand.vmem [shape: f32[9,256], index: 1, kind: input, shape index: {}]   ;;  %s1033_s2 = inlined_call_operand.vmem [shape: bf16[4,4], index: 2, kind: input, shape index: {}]   ;;  %s1034_s3 = inlined_call_operand.vmem [shape: f32[4,1], index: 3, kind: input, shape index: {}]   ;;  %s1035_s4 = inlined_call_operand.vmem [shape: f32[4,9], index: 4, kind: input, shape index: {}]   ;;  %s1036_s5 = inlined_call_operand.vmem [shape: f32[4,1], index: 5, kind: input, shape index: {}]   ;;  %s1037_s6 = inlined_call_operand.vmem [shape: bf16[4,4], index: 6, kind: input, shape index: {}]   ;;  %s1038_s7 = inlined_call_operand.vmem [shape: f32[4,1], index: 7, kind: input, shape index: {}]   ;;  %s1039_s8 = inlined_call_operand.vmem [shape: f32[2,4,512], index: 8, kind: output, shape index: {}]  }
   0x1 LB: > { %s726_s28 = sadd.s32 4294967295, %s789_s27   ;;  %p730_p0 = scmp.ge.s32.totalorder %s789_s27, 1  ;;  %s789_s27 = sphi %s853_s27, %s18_s27  }
   0x2   : > { %p262_p1 = scmp.lt.s32.totalorder %s789_s27, 3 }
   0x4   : > { %p263_p2 = pnand %p730_p0, %p262_p1 }
   0x5   : > { %p296_p3 = scmp.lt.s32.totalorder (!%p263_p2), %s726_s28, 1  ;;  %v791_v0 = vmov (!%p263_p2), 0   ;;  %v314_v1 = vld [vmem:[%s1034_s3] sm:$0xf] (!%p263_p2)  ;;  %v792_v5 = vmov (!%p263_p2), 4   ;;  %v793_v8 = vmov (!%p263_p2), 1   ;;  %v394_v42 = vlaneseq (!%p263_p2) }
   0x6   : > { %266 = sbr.rel (%p263_p2) target bundleno = 639 (0x27f), region = 52  ;;  %367 = vmatprep.mubr.bf16.mxu0 (!%p263_p2), %v791_v0  ;;  %770 = vset.pattern.permute.xlu0 (!%p263_p2), %v791_v0  ;;  %v378_v2 = vld [vmem:[%s1035_s4] sm:$0xf] (!%p263_p2)  ;;  %vm328_vm0 = vcmask (!%p263_p2), 1041408   ;;  %v794_v12 = vmov (!%p263_p2), 3   ;;  %vm324_vm1 = vcmask (!%p263_p2), 31744  }
   0x7   : > { %317 = vperm.xlu0 (!%p263_p2), %770, %v314_v1   ;;  %772 = vset.pattern.permute.xlu1 (!%p263_p2), %v791_v0  ;;  %v311_v13 = vld [vmem:[%s1033_s2] sm:$0x3] (!%p263_p2)  ;;  %v795_v14 = vmov (!%p263_p2), 2   ;;  %v796_v15 = vmov (!%p263_p2), 5   ;;  %v797_v16 = vmov (!%p263_p2), 6   ;;  %v798_v17 = vmov (!%p263_p2), 7  }
   0x8   : > { %410 = vperm.xlu1 (!%p263_p2), %772, %v378_v2   ;;  %650 = vmatprep.mubr.bf16.mxu1 (!%p263_p2), %v791_v0  ;;  %v799_v18 = vmov (!%p263_p2), 8   ;;  %s800_s17 = smov (!%p263_p2), 16   ;;  %s801_s18 = smov (!%p263_p2), 17   ;;  %v592_v28 = vld [vmem:[%s1036_s5] sm:$0xf] (!%p263_p2)  ;;  %v931_v45 = vshrl.u32 (!%p263_p2), %v394_v42, 7 }
   0x9   : > { %s802_s19 = smov (!%p263_p2), 15   ;;  %s803_s20 = smov (!%p263_p2), 1   ;;  %v603_v29 = vld [vmem:[%s1038_s7] sm:$0xf] (!%p263_p2)  ;;  %v933_v46 = vand.u32 (!%p263_p2), 127, %v394_v42  ;;  %v946_v50 = vld [vmem:[%s1032_s1 + $0x8] sm:$0xff] (!%p263_p2) }
   0xa   : > { %s804_s21 = smov (!%p263_p2), 111   ;;  %s805_s22 = smov (!%p263_p2), 127   ;;  %v401_v48 = vsub.s32 (!%p263_p2), 0, %v931_v45  ;;  %v941_v49 = vld [vmem:[%s1032_s1] sm:$0xff] (!%p263_p2)  ;;  %v426_v52 = vsub.s32 (!%p263_p2), 1, %v931_v45  ;;  %v451_v56 = vsub.s32 (!%p263_p2), 2, %v931_v45 }
   0xb   : > { %771 = vset.pattern.permute.xlu0 (!%p263_p2), %v792_v5  ;;  %s806_s25 = smov (!%p263_p2), 113   ;;  %s807_s26 = smov (!%p263_p2), 112   ;;  %vm396_vm2 = vcmp.lt.s32.totalorder (!%p263_p2), %v933_v46, 17  ;;  %vm421_vm3 = vcmp.lt.s32.totalorder (!%p263_p2), %v933_v46, 16  ;;  %vm446_vm4 = vcmp.lt.s32.totalorder (!%p263_p2), %v933_v46, 15  ;;  %vm471_vm5 = vcmp.lt.s32.totalorder (!%p263_p2), %v933_v46, 1 }
   0xc   : > { %385 = vperm.xlu0 (!%p263_p2), %771, %v378_v2   ;;  %773 = vset.pattern.permute.xlu1 (!%p263_p2), %v793_v8  ;;  %v402_v54 = vrot.slane (!%p263_p2), %v941_v49, %v401_v48  ;;  %v406_v55 = vrot.slane (!%p263_p2), %v946_v50, %v401_v48  ;;  %v427_v59 = vrot.slane (!%p263_p2), %v941_v49, %v426_v52  ;;  %vm496_vm6 = vcmp.lt.s32.totalorder (!%p263_p2), %v933_v46, 127 }
   0xd   : > { %s1041_s28 = smov (!%p296_p3, %s726_s28), 1  ;;  %435 = vperm.xlu1 %773, %v378_v2   ;;  %v431_v60 = vrot.slane %v946_v50, %v426_v52  ;;  %v456_v5 = vrot.slane %v946_v50, %v451_v56  ;;  %vm521_vm7 = vcmp.lt.s32.totalorder %v933_v46, 113  ;;  %v551_v42 = vsub.s32 7, %v931_v45 }
   0xe   : > { %s743_s11 = sshll.u32 %s1041_s28, 4  ;;  %vm546_vm8 = vcmp.lt.s32.totalorder %v933_v46, 112  ;;  %vm571_vm9 = vcmp.lt.s32.totalorder %v933_v46, 111 }
   0xf   : > { %s879_s14 = scalar_lea.vmem %s1031_s0, %s743_s11  ;;  %s305_s23 = scalar_lea.vmem %s1039_s8, %s743_s11 }
  0x10   : > { %v310_v3 = vld [vmem:[%s879_s14 + $0x8] sm:$0xf0]  ;;  %v309_v4 = vld [vmem:[%s879_s14] sm:$0xf0]  ;;  %775 = vset.pattern.permute.xlu0 %v794_v12 }
  0x11   : > { %v313_v6 = vpack.c.bf16 %v310_v3, %v310_v3  ;;  %v312_v7 = vpack.c.bf16 %v309_v4, %v309_v4  ;;  %485 = vperm.xlu0 %775, %v378_v2   ;;  %774 = vset.pattern.permute.xlu1 %v795_v14  ;;  %v452_v4 = vrot.slane %v941_v49, %v451_v56 }
  0x12   : > { %460 = vperm.xlu1 %774, %v378_v2  }
  0x13   : > { %v323_v9 = vrot.slane %v313_v6, 2  ;;  %v322_v10 = vrot.slane %v312_v7, 2  ;;  %v501_v6 = vsub.s32 5, %v931_v45  ;;  %v526_v7 = vsub.s32 6, %v931_v45 }
  0x15   : > { %735 = vmatprep.subr.msk.bf16.mxu0 %vm328_vm0, %v323_v9  ;;  %v330_v11 = vsel %vm328_vm0, %v322_v10, 0  ;;  %776 = vset.pattern.permute.xlu0 %v796_v15 }
  0x16   : > { %336 = vmatpush1.bf16.msra.mxu0 %v330_v11  ;;  %510 = vperm.xlu0 %776, %v378_v2  }
  0x17   : > { %781 = vset.pattern.permute.xlu1 %v791_v0 }
  0x19   : > { %736 = vmatmul.mubr.msk.bf16.vlgmr.msra.gmra.mrb[0].mxu0 %vm324_vm1, %v311_v13 }
  0x1a   : > { %777 = vset.pattern.permute.xlu0 %v797_v16 }
  0x1b   : > { %535 = vperm.xlu0 %777, %v378_v2  }
  0x1f   : > { %778 = vset.pattern.permute.xlu0 %v798_v17 }
  0x20   : > { %560 = vperm.xlu0 %778, %v378_v2  }
  0x24   : > { %779 = vset.pattern.permute.xlu0 %v799_v18 }
  0x86   : > { %v318_v19 = vpop.permute.xlu0 %317 }
  0x87   : > { %v411_v30 = vpop.permute.xlu1 %410 }
  0x8b   : > { %v386_v32 = vpop.permute.xlu0 %385 }
  0x8c   : > { %v917_v31 = vpop.permute.xlu1 %435 }
  0x90   : > { %v919_v33 = vpop.permute.xlu0 %485 }
  0x91   : > { %v921_v34 = vpop.permute.xlu1 %460 }
  0x95   : > { %v923_v35 = vpop.permute.xlu0 %510 }
  0x9a   : > { %v925_v38 = vpop.permute.xlu0 %535 }
  0x9f   : > { %v927_v40 = vpop.permute.xlu0 %560 }
  0xec   : > { %v369_v20 = vpop.f32.mrb[0].mxu0 }
  0xed   : > { %v370_v21 = vadd.f32 %v369_v20, %v318_v19  ;;  %v371_v22 = vpop.f32.mrb[1].mxu0 }
  0xee   : > { %v373_v23 = vpop.f32.mrb[2].mxu0  ;;  %v372_v25 = vadd.f32 %v371_v22, %v318_v19  ;;  %v502_v22 = vrot.slane %v941_v49, %v501_v6 }
  0xef   : > { %v890_v24 = vmax.f32 %v370_v21, 0.0  ;;  %v374_v26 = vpop.f32.mrb[3].mxu0  ;;  %v506_v23 = vrot.slane %v946_v50, %v501_v6  ;;  %v738_v6 = vld [vmem:[%s1032_s1 + $0x18] ss:$0 sm:$0xff] }
  0xf0   : > { %v894_v27 = vmax.f32 %v372_v25, 0.0 }
  0xf1   : > { %417 = vrot.lane.b32.xlu0 %v890_v24, %s800_s17  ;;  %390 = vrot.lane.b32.xlu1 %v890_v24, %s801_s18  ;;  %v388_v1 = vmul.f32 %v386_v32, %v890_v24 }
  0xf2   : > { %v389_v13 = vmul.f32 %v386_v32, %v894_v27 }
  0xf5   : > { %392 = vrot.lane.b32.xlu0 %v894_v27, %s801_s18  ;;  %442 = vrot.lane.b32.xlu1 %v890_v24, %s802_s19 }
  0xf9   : > { %585 = vperm.xlu0 %779, %v378_v2   ;;  %467 = vrot.lane.b32.xlu1 %v890_v24, %s803_s20 }
  0xfd   : > { %567 = vrot.lane.b32.xlu0 %v890_v24, %s804_s21  ;;  %492 = vrot.lane.b32.xlu1 %v890_v24, %s805_s22 }
  0xfe   : > { %780 = vset.pattern.permute.xlu0 %v791_v0  ;;  %v476_v0 = vsub.s32 3, %v931_v45 }
 0x100   : > { %v477_v14 = vrot.slane %v941_v49, %v476_v0  ;;  %v481_v15 = vrot.slane %v946_v50, %v476_v0 }
 0x101   : > { %517 = vrot.lane.b32.xlu1 %v890_v24, %s806_s25  ;;  %595 = vperm.xlu0 %780, %v592_v28  }
 0x105   : > { %542 = vrot.lane.b32.xlu1 %v890_v24, %s807_s26 }
 0x109   : > { %419 = vrot.lane.b32.xlu1 %v894_v27, %s800_s17 }
 0x10d   : > { %444 = vrot.lane.b32.xlu1 %v894_v27, %s802_s19 }
 0x111   : > { %469 = vrot.lane.b32.xlu1 %v894_v27, %s803_s20 }
 0x115   : > { %494 = vrot.lane.b32.xlu1 %v894_v27, %s805_s22 }
 0x119   : > { %519 = vrot.lane.b32.xlu1 %v894_v27, %s806_s25 }
 0x11d   : > { %544 = vrot.lane.b32.xlu1 %v894_v27, %s807_s26 }
 0x121   : > { %569 = vrot.lane.b32.xlu1 %v894_v27, %s804_s21  ;;  %v527_v27 = vrot.slane %v941_v49, %v526_v7 }
 0x125   : > { %606 = vperm.xlu1 %781, %v603_v29  }
 0x163   : > { %v391_v36 = vpop.permute.xlu1 %390  ;;  %v418_v44 = vpop.permute.xlu0 %417 }
 0x167   : > { %v443_v37 = vpop.permute.xlu1 %442  ;;  %v393_v51 = vpop.permute.xlu0 %392 }
 0x168   : > { %v397_v57 = vsel %vm396_vm2, %v391_v36, %v393_v51  ;;  %v398_v58 = vsel %vm396_vm2, %v393_v51, %v391_v36 }
 0x169   : > { %v407_v2 = vmul.f32 %v402_v54, %v398_v58  ;;  %v408_v3 = vmul.f32 %v406_v55, %v397_v57 }
 0x16b   : > { %v468_v39 = vpop.permute.xlu1 %467  ;;  %v413_v16 = vmul.f32 %v411_v30, %v407_v2  ;;  %v414_v17 = vmul.f32 %v411_v30, %v408_v3 }
 0x16d   : > { %v415_v36 = vadd.f32 %v413_v16, %v388_v1 }
 0x16f   : > { %v493_v41 = vpop.permute.xlu1 %492 }
 0x173   : > { %v929_v43 = vpop.permute.xlu1 %517 }
 0x177   : > { %v935_v47 = vpop.permute.xlu1 %542 }
 0x17b   : > { %v420_v53 = vpop.permute.xlu1 %419 }
 0x17c   : > { %v422_v62 = vsel %vm421_vm3, %v418_v44, %v420_v53  ;;  %v423_v63 = vsel %vm421_vm3, %v420_v53, %v418_v44 }
 0x17d   : > { %v432_v8 = vmul.f32 %v427_v59, %v423_v63  ;;  %v433_v9 = vmul.f32 %v431_v60, %v422_v62  ;;  %v552_v59 = vrot.slane %v941_v49, %v551_v42  ;;  %v556_v60 = vrot.slane %v946_v50, %v551_v42 }
 0x17f   : > { %v445_v61 = vpop.permute.xlu1 %444  ;;  %v438_v24 = vmul.f32 %v917_v31, %v432_v8  ;;  %v439_v25 = vmul.f32 %v917_v31, %v433_v9 }
 0x180   : > { %v447_v10 = vsel %vm446_vm4, %v443_v37, %v445_v61  ;;  %v448_v11 = vsel %vm446_vm4, %v445_v61, %v443_v37  ;;  %v416_v37 = vadd.f32 %v414_v17, %v389_v13 }
 0x181   : > { %v457_v20 = vmul.f32 %v452_v4, %v448_v11  ;;  %v458_v21 = vmul.f32 %v456_v5, %v447_v10  ;;  %v440_v48 = vadd.f32 %v438_v24, %v415_v36 }
 0x182   : > { %v441_v51 = vadd.f32 %v439_v25, %v416_v37 }
 0x183   : > { %v470_v12 = vpop.permute.xlu1 %469  ;;  %v463_v31 = vmul.f32 %v921_v34, %v457_v20  ;;  %v464_v44 = vmul.f32 %v921_v34, %v458_v21  ;;  %v586_v34 = vpop.permute.xlu0 %585 }
 0x184   : > { %v472_v18 = vsel %vm471_vm5, %v468_v39, %v470_v12  ;;  %v473_v19 = vsel %vm471_vm5, %v470_v12, %v468_v39  ;;  %v531_v39 = vrot.slane %v946_v50, %v526_v7 }
 0x185   : > { %v482_v28 = vmul.f32 %v477_v14, %v473_v19  ;;  %v483_v29 = vmul.f32 %v481_v15, %v472_v18  ;;  %v465_v61 = vadd.f32 %v463_v31, %v440_v48  ;;  %v466_v62 = vadd.f32 %v464_v44, %v441_v51 }
 0x187   : > { %v495_v26 = vpop.permute.xlu1 %494  ;;  %v488_v55 = vmul.f32 %v919_v33, %v482_v28  ;;  %v568_v7 = vpop.permute.xlu0 %567  ;;  %v782_v28 = vld [vmem:[%s879_s14] ss:$8 sps:$4 sm:$0xff]  }
 0x188   : > { %v497_v30 = vsel %vm496_vm6, %v493_v41, %v495_v26  ;;  %v498_v32 = vsel %vm496_vm6, %v495_v26, %v493_v41  ;;  %v489_v41 = vmul.f32 %v919_v33, %v483_v29  ;;  %665 = vst [vmem:[%s305_s23] sm:$0xff] %v782_v28 }
 0x189   : > { %v507_v52 = vmul.f32 %v502_v22, %v497_v30  ;;  %v508_v53 = vmul.f32 %v506_v23, %v498_v32  ;;  %v490_v1 = vadd.f32 %v488_v55, %v465_v61 }
 0x18a   : > { %v491_v2 = vadd.f32 %v489_v41, %v466_v62 }
 0x18b   : > { %v520_v54 = vpop.permute.xlu1 %519  ;;  %v513_v63 = vmul.f32 %v923_v35, %v507_v52  ;;  %v514_v33 = vmul.f32 %v923_v35, %v508_v53  ;;  %v737_v35 = vld [vmem:[%s1032_s1 + $0x10] ss:$0 sm:$0xff]  ;;  %v596_v21 = vpop.permute.xlu0 %595 }
 0x18c   : > { %v522_v56 = vsel %vm521_vm7, %v929_v43, %v520_v54  ;;  %v523_v45 = vsel %vm521_vm7, %v520_v54, %v929_v43 }
 0x18d   : > { %v532_v57 = vmul.f32 %v527_v27, %v522_v56  ;;  %v533_v58 = vmul.f32 %v531_v39, %v523_v45  ;;  %v515_v8 = vadd.f32 %v513_v63, %v490_v1  ;;  %v516_v9 = vadd.f32 %v514_v33, %v491_v2  ;;  %v600_v27 = vld [vmem:[%s1037_s6] sm:$0x3] }
 0x18f   : > { %v545_v0 = vpop.permute.xlu1 %544  ;;  %v538_v50 = vmul.f32 %v925_v38, %v532_v57  ;;  %v539_v3 = vmul.f32 %v925_v38, %v533_v58 }
 0x190   : > { %v547_v43 = vsel %vm546_vm8, %v935_v47, %v545_v0  ;;  %v548_v49 = vsel %vm546_vm8, %v545_v0, %v935_v47 }
 0x191   : > { %v557_v4 = vmul.f32 %v552_v59, %v547_v43  ;;  %v558_v5 = vmul.f32 %v556_v60, %v548_v49  ;;  %v540_v15 = vadd.f32 %v538_v50, %v515_v8  ;;  %v541_v16 = vadd.f32 %v539_v3, %v516_v9 }
 0x193   : > { %v563_v10 = vmul.f32 %v927_v40, %v557_v4  ;;  %v564_v47 = vmul.f32 %v927_v40, %v558_v5  ;;  %v570_v11 = vpop.permute.xlu1 %569 }
 0x194   : > { %v572_v38 = vsel %vm571_vm9, %v568_v7, %v570_v11  ;;  %v573_v12 = vsel %vm571_vm9, %v570_v11, %v568_v7 }
 0x195   : > { %v582_v13 = vmul.f32 %v737_v35, %v572_v38  ;;  %v583_v14 = vmul.f32 %v738_v6, %v573_v12  ;;  %v565_v17 = vadd.f32 %v563_v10, %v540_v15  ;;  %v566_v18 = vadd.f32 %v564_v47, %v541_v16 }
 0x197   : > { %v588_v19 = vmul.f32 %v586_v34, %v582_v13  ;;  %v589_v20 = vmul.f32 %v586_v34, %v583_v14 }
 0x199   : > { %v590_v22 = vadd.f32 %v588_v19, %v565_v17  ;;  %v591_v40 = vadd.f32 %v589_v20, %v566_v18 }
 0x19b   : > { %v598_v23 = vadd.f32 %v596_v21, %v590_v22  ;;  %v599_v24 = vadd.f32 %v596_v21, %v591_v40 }
 0x19d   : > { %v601_v25 = vpack.c.bf16 %v598_v23, %v598_v23  ;;  %v602_v26 = vpack.c.bf16 %v599_v24, %v599_v24 }
 0x19f   : > { %739 = vmatprep.subr.msk.bf16.mxu1 %vm328_vm0, %v602_v26  ;;  %v613_v46 = vsel %vm328_vm0, %v601_v25, 0 }
 0x1a0   : > { %619 = vmatpush1.bf16.msra.mxu1 %v613_v46 }
 0x1a3   : > { %740 = vmatmul.mubr.msk.bf16.vlgmr.msra.gmra.mrb[0].mxu1 %vm324_vm1, %v600_v27 }
 0x1a4   : > { %v607_v29 = vpop.permute.xlu1 %606 }
 0x276   : > { %v652_v30 = vpop.f32.mrb[0].mxu1 }
 0x277   : > { %v653_v32 = vadd.f32 %v652_v30, %v607_v29  ;;  %v654_v36 = vpop.f32.mrb[1].mxu1 }
 0x278   : > { %v655_v37 = vadd.f32 %v654_v36, %v607_v29  ;;  %v656_v39 = vpop.f32.mrb[2].mxu1 }
 0x279   : > { %v659_v42 = vmax.f32 %v653_v32, 0.0  ;;  %v657_v31 = vpop.f32.mrb[3].mxu1 }
 0x27a   : > { %v660_v44 = vmax.f32 %v655_v37, 0.0 }
 0x27c   : > { %v668_v48 = vcombine.low %v659_v42, %v660_v44 }
 0x27e   : > { %670 = vst [vmem:[%s305_s23 + $0x8] sm:$0xff] %v668_v48 }
 0x27f PF: > { %s18_s27 = sadd.s32 1, %s789_s27  }
 0x280   : > { %p15_p4 = scmp.ge.s32.totalorder %s18_s27, 4  }
 0x282   :  { %17 = sbr.rel (!%p15_p4) target bundleno = 1 (0x1), region = 82 }

</bundles_post_ra>
